<compile_context>
chip_gen: v7x
topology: tpu7x:2x2x1
jax: 0.10.0
libtpu: 0.0.40
codegen_flags: <defaults>
</compile_context>

<pallas_src>
import jax
import jax.numpy as jnp
from jax import lax
from jax.experimental import pallas as pl
from jax.experimental.pallas import tpu as pltpu


_NEG_BIG = -1e30   # finite "minus infinity" used to pad the class dimension
_TINY = 1e-30      # clamp for logs (robustness only; unused on normal inputs)
                   # (documented divergence: torch would give +/-inf for a
                   #  fully-underflowed student ground-truth probability)


def _round_up(x, m):
    return (x + m - 1) // m * m


# ---------------- Pallas kernel ----------------------------------------------

def _soft_distill_kernel(teacher_ref, student_ref, target_ref, temp_ref, out_ref):
    """One batch tile -> per-tile partial sums (ce, tckd, nckd), lane-dense."""
    teacher = teacher_ref[...].astype(jnp.float32)    # (TB, Cp)
    student = student_ref[...].astype(jnp.float32)    # (TB, Cp)
    target = target_ref[...]                          # (TB, 1) int32, -1 => padded row
    inv_t = 1.0 / temp_ref[0, 0]

    tb, cp = student.shape
    class_ids = lax.broadcasted_iota(jnp.int32, (tb, cp), 1)
    is_gt = class_ids == target                                 # bool (TB, Cp)
    valid = (target >= 0).astype(jnp.float32)                   # (TB, 1)

    # ---- cross entropy on raw student logits: per-row scalars only ----------
    m_raw = jnp.max(student, axis=1, keepdims=True)
    x_shift = student - m_raw
    sum_exp_raw = jnp.sum(jnp.exp(x_shift), axis=1, keepdims=True)
    gt_logit = jnp.sum(jnp.where(is_gt, student, 0.0), axis=1, keepdims=True)
    ce_rows = (m_raw + jnp.log(sum_exp_raw) - gt_logit) * valid
    ce_sum = jnp.sum(ce_rows)

    # ---- temperature-scaled student softmax: reuse the raw max --------------
    # max(student * inv_t) == max(student) * inv_t  (inv_t > 0)
    e_s = jnp.exp(x_shift * inv_t)
    sum_s = jnp.sum(e_s, axis=1, keepdims=True)
    e_s_gt = jnp.sum(jnp.where(is_gt, e_s, 0.0), axis=1, keepdims=True)
    m_s = m_raw * inv_t

    # ---- temperature-scaled teacher softmax ----------------------------------
    m_t_raw = jnp.max(teacher, axis=1, keepdims=True)
    e_t = jnp.exp((teacher - m_t_raw) * inv_t)
    sum_t = jnp.sum(e_t, axis=1, keepdims=True)
    e_t_gt = jnp.sum(jnp.where(is_gt, e_t, 0.0), axis=1, keepdims=True)
    m_t = m_t_raw * inv_t

    # ---- TCKD: two-bin [p_gt, p_other] distributions (per-row scalars) -------
    s1 = e_s_gt / sum_s
    t1 = e_t_gt / sum_t
    s2 = 1.0 - s1
    t2 = 1.0 - t1
    log_s1 = jnp.log(jnp.maximum(s1, _TINY))
    log_s2 = jnp.log(jnp.maximum(s2, _TINY))
    log_t1 = jnp.log(jnp.maximum(t1, _TINY))
    log_t2 = jnp.log(jnp.maximum(t2, _TINY))
    tckd_rows = (jnp.where(t1 > 0.0, t1 * (log_t1 - log_s1), 0.0)
                 + jnp.where(t2 > 0.0, t2 * (log_t2 - log_s2), 0.0)) * valid
    tckd_sum = jnp.sum(tckd_rows)

    # ---- NCKD: algebraic rewrite (no full-matrix divide / log-softmax) -------
    # sum_j p_t2_j*(log p_t2_j - log p_s2_j)
    #   = (1/sum_other_t) * sum_{j!=gt} e_t_j*(tt_j - st_j)
    #     + (m_s - m_t) + log(sum_other_s) - log(sum_other_t)
    # Padded lanes: e_t == 0 and (teacher - student) == 0, so they contribute 0.
    sum_other_s = jnp.maximum(sum_s - e_s_gt, _TINY)
    sum_other_t = jnp.maximum(sum_t - e_t_gt, _TINY)
    diff = (teacher - student) * inv_t                          # tt_j - st_j
    inner = jnp.sum(jnp.where(is_gt, 0.0, e_t) * diff, axis=1, keepdims=True)
    nckd_rows = (inner / sum_other_t
                 + (m_s - m_t)
                 + jnp.log(sum_other_s) - jnp.log(sum_other_t)) * valid
    nckd_sum = jnp.sum(nckd_rows)

    # ---- lane-dense per-tile partials: lanes 0,1,2 of row 0 -------------------
    rows = lax.broadcasted_iota(jnp.int32, (8, 128), 0)
    lanes = lax.broadcasted_iota(jnp.int32, (8, 128), 1)
    first = rows == 0
    partial = jnp.where(first & (lanes == 0), ce_sum,
              jnp.where(first & (lanes == 1), tckd_sum,
              jnp.where(first & (lanes == 2), nckd_sum, 0.0)))
    out_ref[0, :, :] = partial


# ---------------- wrapper -----------------------------------------------------

def _vmem_scoped_limit_bytes():
    """~96 MiB on 128 MiB chips (v5e/v6e), ~48 MiB on 64 MiB chips (v7x)."""
    phys = 64 * 1024 * 1024  # conservative fallback (v7x-sized)
    try:
        info = pltpu.get_tpu_info()
        phys = int(getattr(info, "vmem_capacity_bytes", phys)) or phys
    except Exception:
        pass
    return min(phys * 3 // 4, 100 * 1024 * 1024)


def soft_distillation_loss(teacher_y, student_y, y, temperature,
                           lambda_balancing=0.5, alpha=1.0, beta=8.0,
                           epoch=None):
    # TODO(synk): `epoch` is accepted by the PyTorch forward but never used.
    teacher_y = jnp.asarray(teacher_y)
    student_y = jnp.asarray(student_y)
    B, C = student_y.shape
    assert teacher_y.shape == (B, C)

    # Pad class dim to a lane multiple; pad value vanishes in every softmax.
    c_pad = _round_up(max(C, 128), 128)

    # --- VMEM-aware tile sizing ------------------------------------------------
    # Footprint per batch row: 2 inputs x 2 pipeline buffers in native dtype
    # plus ~8 live f32 (tile_b, c_pad) temporaries inside the kernel body.
    in_bytes = jnp.dtype(student_y.dtype).itemsize
    vmem_limit = _vmem_scoped_limit_bytes()
    tile_budget = int(vmem_limit * 0.7)
    per_row = 2 * 2 * c_pad * in_bytes + 8 * c_pad * 4
    tile_cap = max(8, min(2048, tile_budget // per_row))
    tile_cap = max(8, (tile_cap // 8) * 8)

    tile_b = min(tile_cap, _round_up(B, 8))
    if B >= 16:
        # Keep >= 2 grid steps so the "parallel" axis can shard across the two
        # TensorCores on v7x (per-step overhead is negligible on v5e/v6e).
        tile_b = min(tile_b, _round_up(pl.cdiv(B, 2), 8))
    b_pad = _round_up(B, tile_b)
    num_tiles = b_pad // tile_b

    def pad_logits(x):
        neg = jnp.asarray(_NEG_BIG, x.dtype)
        if c_pad != C:
            x = jnp.pad(x, ((0, 0), (0, c_pad - C)), constant_values=neg)
        if b_pad != B:
            x = jnp.pad(x, ((0, b_pad - B), (0, 0)))
        return x

    teacher_p = pad_logits(teacher_y)   # native dtype kept (bf16 stays bf16)
    student_p = pad_logits(student_y)

    target = jnp.asarray(y, jnp.int32).reshape(B, 1)
    if b_pad != B:
        target = jnp.pad(target, ((0, b_pad - B), (0, 0)), constant_values=-1)
    temp = jnp.asarray(temperature, jnp.float32).reshape(1, 1)

    grid_spec = pltpu.PrefetchScalarGridSpec(
        num_scalar_prefetch=0,
        grid=(num_tiles,),
        in_specs=[
            pl.BlockSpec((tile_b, c_pad), lambda i: (i, 0)),        # teacher logits
            pl.BlockSpec((tile_b, c_pad), lambda i: (i, 0)),        # student logits
            pl.BlockSpec((tile_b, 1), lambda i: (i, 0)),            # labels
            pl.BlockSpec(memory_space=pltpu.MemorySpace.SMEM),      # temperature (1,1)
        ],
        out_specs=pl.BlockSpec((1, 8, 128), lambda i: (i, 0, 0)),   # per-tile partials
    )

    partials = pl.pallas_call(
        _soft_distill_kernel,
        out_shape=jax.ShapeDtypeStruct((num_tiles, 8, 128), jnp.float32),
        grid_spec=grid_spec,
        compiler_params=pltpu.CompilerParams(
            dimension_semantics=("parallel",),
            vmem_limit_bytes=int(vmem_limit),
        ),
    )(teacher_p, student_p, target, temp)

    # Final scalar combine in the wrapper (keeps the grid axis parallel).
    sums = jnp.sum(partials, axis=(0, 1))               # (128,)
    ce_sum, tckd_sum, nckd_sum = sums[0], sums[1], sums[2]
    t = jnp.asarray(temperature, jnp.float32)
    inv_b = 1.0 / B
    loss_ce = ce_sum * inv_b
    dkd = (alpha * tckd_sum + beta * nckd_sum) * (t * t) * inv_b
    return lambda_balancing * loss_ce + lambda_balancing * dkd


# ---------------- pure-JAX reference (matches torch semantics) ----------------

def _reference_loss(teacher_y, student_y, y, temperature,
                    lambda_balancing=0.5, alpha=1.0, beta=8.0):
    teacher_y = jnp.asarray(teacher_y, jnp.float32)
    student_y = jnp.asarray(student_y, jnp.float32)
    B, C = student_y.shape
    y = jnp.asarray(y, jnp.int32)
    gt = jax.nn.one_hot(y, C, dtype=jnp.float32)
    other = 1.0 - gt

    def kl_div_sum(log_p, q):
        # torch.F.kl_div(log_p, q, size_average=False): sum q*(log q - log_p),
        # with the q == 0 terms defined as 0 (xlogy semantics).
        safe_q = jnp.where(q > 0.0, q, 1.0)
        return jnp.sum(jnp.where(q > 0.0, q * (jnp.log(safe_q) - log_p), 0.0))

    loss_ce = -jnp.mean(jnp.sum(gt * jax.nn.log_softmax(student_y, axis=1), axis=1))

    st, tt = student_y / temperature, teacher_y / temperature
    p_s, p_t = jax.nn.softmax(st, axis=1), jax.nn.softmax(tt, axis=1)
    cat_s = jnp.concatenate([jnp.sum(p_s * gt, 1, keepdims=True),
                             jnp.sum(p_s * other, 1, keepdims=True)], axis=1)
    cat_t = jnp.concatenate([jnp.sum(p_t * gt, 1, keepdims=True),
                             jnp.sum(p_t * other, 1, keepdims=True)], axis=1)
    tckd = kl_div_sum(jnp.log(cat_s), cat_t) * temperature ** 2 / B

    p_t2 = jax.nn.softmax(tt - 1000.0 * gt, axis=1)
    log_p_s2 = jax.nn.log_softmax(st - 1000.0 * gt, axis=1)
    nckd = kl_div_sum(log_p_s2, p_t2) * temperature ** 2 / B

    dkd = alpha * tckd + beta * nckd
    return lambda_balancing * loss_ce + lambda_balancing * dkd


# ---------------- main --------------------------------------------------------

if __name__ == "__main__":
    B, C = 8, 32
    lambda_balancing, alpha, beta = 0.5, 1.0, 8.0
    temperature = 4.0

    key = jax.random.PRNGKey(0)
    k1, k2, k3 = jax.random.split(key, 3)
    teacher_y = jax.random.normal(k1, (B, C), dtype=jnp.float32)
    student_y = jax.random.normal(k2, (B, C), dtype=jnp.float32)
    y = jax.random.randint(k3, (B,), 0, C, dtype=jnp.int32)

    loss = soft_distillation_loss(teacher_y, student_y, y, temperature,
                                  lambda_balancing, alpha, beta)
    loss = jax.block_until_ready(loss)

    ref = _reference_loss(teacher_y, student_y, y, temperature,
                          lambda_balancing, alpha, beta)
    assert jnp.allclose(loss, ref, rtol=5e-4, atol=1e-5), (loss, ref)

    print("KERNEL_OK")
</pallas_src>

<mosaic_0001>
module attributes {stable_mosaic.version = 11 : i64} {
  func.func @_soft_distill_kernel(%arg0: i32, %arg1: memref<8x128xf32, #tpu.memory_space<vmem>>, %arg2: memref<8x128xf32, #tpu.memory_space<vmem>>, %arg3: memref<8x1xi32, #tpu.memory_space<vmem>>, %arg4: memref<1x1xf32, #tpu.memory_space<smem>>, %arg5: memref<1x8x128xf32, #tpu.memory_space<vmem>>) attributes {dimension_semantics = [#tpu.dimension_semantics<parallel>], iteration_bounds = array<i64: 1>, scalar_prefetch = 0 : i64, scratch_operands = 0 : i64, tpu.core_type = #tpu.core_type<tc>, window_params = [{transform_indices = @transform_0, window_bounds = array<i64: 8, 128>}, {transform_indices = @transform_1, window_bounds = array<i64: 8, 128>}, {transform_indices = @transform_2, window_bounds = array<i64: 8, 1>}, {transform_indices = @transform_3, window_bounds = array<i64: 1, 1>}, {transform_indices = @transform_4, window_bounds = array<i64: 1, 8, 128>}]} {
    %c0 = arith.constant 0 : index
    %c0_0 = arith.constant 0 : index
    %0 = vector.load %arg1[%c0, %c0_0] : memref<8x128xf32, #tpu.memory_space<vmem>>, vector<8x128xf32>
    %c0_1 = arith.constant 0 : index
    %c0_2 = arith.constant 0 : index
    %1 = vector.load %arg2[%c0_1, %c0_2] : memref<8x128xf32, #tpu.memory_space<vmem>>, vector<8x128xf32>
    %c0_3 = arith.constant 0 : index
    %c0_4 = arith.constant 0 : index
    %2 = vector.load %arg3[%c0_3, %c0_4] : memref<8x1xi32, #tpu.memory_space<vmem>>, vector<8x1xi32>
    %c0_5 = arith.constant 0 : index
    %c0_6 = arith.constant 0 : index
    %3 = memref.load %arg4[%c0_5, %c0_6] : memref<1x1xf32, #tpu.memory_space<smem>>
    %cst = arith.constant 1.000000e+00 : f32
    %4 = arith.divf %cst, %3 : f32
    %5 = tpu.iota {dimensions = array<i32: 1>} : vector<8x128xi32>
    %6 = vector.broadcast %2 : vector<8x1xi32> to vector<8x128xi32>
    %7 = arith.cmpi eq, %5, %6 : vector<8x128xi32>
    %c0_i32 = arith.constant 0 : i32
    %8 = vector.broadcast %c0_i32 : i32 to vector<8x1xi32>
    %9 = arith.cmpi sge, %2, %8 : vector<8x1xi32>
    %10 = arith.extui %9 : vector<8x1xi1> to vector<8x1xi32>
    %11 = arith.sitofp %10 : vector<8x1xi32> to vector<8x1xf32>
    %cst_7 = arith.constant dense<0xFF800000> : vector<8xf32>
    %12 = vector.multi_reduction <maximumf>, %1, %cst_7 [1] : vector<8x128xf32> to vector<8xf32>
    %13 = vector.shape_cast %12 : vector<8xf32> to vector<8x1xf32>
    %14 = vector.broadcast %13 : vector<8x1xf32> to vector<8x128xf32>
    %15 = arith.subf %1, %14 : vector<8x128xf32>
    %16 = math.exp %15 : vector<8x128xf32>
    %cst_8 = arith.constant dense<0.000000e+00> : vector<8xf32>
    %17 = vector.multi_reduction <add>, %16, %cst_8 [1] : vector<8x128xf32> to vector<8xf32>
    %18 = vector.shape_cast %17 : vector<8xf32> to vector<8x1xf32>
    %cst_9 = arith.constant 0.000000e+00 : f32
    %19 = vector.broadcast %cst_9 : f32 to vector<8x128xf32>
    %20 = arith.select %7, %1, %19 : vector<8x128xi1>, vector<8x128xf32>
    %cst_10 = arith.constant dense<0.000000e+00> : vector<8xf32>
    %21 = vector.multi_reduction <add>, %20, %cst_10 [1] : vector<8x128xf32> to vector<8xf32>
    %22 = vector.shape_cast %21 : vector<8xf32> to vector<8x1xf32>
    %23 = math.log %18 : vector<8x1xf32>
    %24 = arith.addf %13, %23 : vector<8x1xf32>
    %25 = arith.subf %24, %22 : vector<8x1xf32>
    %26 = arith.mulf %25, %11 : vector<8x1xf32>
    %27 = vector.shape_cast %26 : vector<8x1xf32> to vector<1x8x1xf32>
    %cst_11 = arith.constant dense<0.000000e+00> : vector<1xf32>
    %28 = vector.multi_reduction <add>, %27, %cst_11 [1, 2] : vector<1x8x1xf32> to vector<1xf32>
    %29 = vector.shape_cast %28 : vector<1xf32> to vector<1x1x1xf32>
    %30 = vector.extract %29[0, 0, 0] : f32 from vector<1x1x1xf32>
    %31 = vector.broadcast %4 : f32 to vector<8x128xf32>
    %32 = arith.mulf %15, %31 : vector<8x128xf32>
    %33 = math.exp %32 : vector<8x128xf32>
    %cst_12 = arith.constant dense<0.000000e+00> : vector<8xf32>
    %34 = vector.multi_reduction <add>, %33, %cst_12 [1] : vector<8x128xf32> to vector<8xf32>
    %35 = vector.shape_cast %34 : vector<8xf32> to vector<8x1xf32>
    %cst_13 = arith.constant 0.000000e+00 : f32
    %36 = vector.broadcast %cst_13 : f32 to vector<8x128xf32>
    %37 = arith.select %7, %33, %36 : vector<8x128xi1>, vector<8x128xf32>
    %cst_14 = arith.constant dense<0.000000e+00> : vector<8xf32>
    %38 = vector.multi_reduction <add>, %37, %cst_14 [1] : vector<8x128xf32> to vector<8xf32>
    %39 = vector.shape_cast %38 : vector<8xf32> to vector<8x1xf32>
    %40 = vector.broadcast %4 : f32 to vector<8x1xf32>
    %41 = arith.mulf %13, %40 : vector<8x1xf32>
    %cst_15 = arith.constant dense<0xFF800000> : vector<8xf32>
    %42 = vector.multi_reduction <maximumf>, %0, %cst_15 [1] : vector<8x128xf32> to vector<8xf32>
    %43 = vector.shape_cast %42 : vector<8xf32> to vector<8x1xf32>
    %44 = vector.broadcast %43 : vector<8x1xf32> to vector<8x128xf32>
    %45 = arith.subf %0, %44 : vector<8x128xf32>
    %46 = vector.broadcast %4 : f32 to vector<8x128xf32>
    %47 = arith.mulf %45, %46 : vector<8x128xf32>
    %48 = math.exp %47 : vector<8x128xf32>
    %cst_16 = arith.constant dense<0.000000e+00> : vector<8xf32>
    %49 = vector.multi_reduction <add>, %48, %cst_16 [1] : vector<8x128xf32> to vector<8xf32>
    %50 = vector.shape_cast %49 : vector<8xf32> to vector<8x1xf32>
    %cst_17 = arith.constant 0.000000e+00 : f32
    %51 = vector.broadcast %cst_17 : f32 to vector<8x128xf32>
    %52 = arith.select %7, %48, %51 : vector<8x128xi1>, vector<8x128xf32>
    %cst_18 = arith.constant dense<0.000000e+00> : vector<8xf32>
    %53 = vector.multi_reduction <add>, %52, %cst_18 [1] : vector<8x128xf32> to vector<8xf32>
    %54 = vector.shape_cast %53 : vector<8xf32> to vector<8x1xf32>
    %55 = vector.broadcast %4 : f32 to vector<8x1xf32>
    %56 = arith.mulf %43, %55 : vector<8x1xf32>
    %57 = arith.divf %39, %35 : vector<8x1xf32>
    %58 = arith.divf %54, %50 : vector<8x1xf32>
    %cst_19 = arith.constant 1.000000e+00 : f32
    %59 = vector.broadcast %cst_19 : f32 to vector<8x1xf32>
    %60 = arith.subf %59, %57 : vector<8x1xf32>
    %cst_20 = arith.constant 1.000000e+00 : f32
    %61 = vector.broadcast %cst_20 : f32 to vector<8x1xf32>
    %62 = arith.subf %61, %58 : vector<8x1xf32>
    %cst_21 = arith.constant 1.000000e-30 : f32
    %63 = vector.broadcast %cst_21 : f32 to vector<8x1xf32>
    %64 = arith.maximumf %57, %63 : vector<8x1xf32>
    %65 = math.log %64 : vector<8x1xf32>
    %cst_22 = arith.constant 1.000000e-30 : f32
    %66 = vector.broadcast %cst_22 : f32 to vector<8x1xf32>
    %67 = arith.maximumf %60, %66 : vector<8x1xf32>
    %68 = math.log %67 : vector<8x1xf32>
    %cst_23 = arith.constant 1.000000e-30 : f32
    %69 = vector.broadcast %cst_23 : f32 to vector<8x1xf32>
    %70 = arith.maximumf %58, %69 : vector<8x1xf32>
    %71 = math.log %70 : vector<8x1xf32>
    %cst_24 = arith.constant 1.000000e-30 : f32
    %72 = vector.broadcast %cst_24 : f32 to vector<8x1xf32>
    %73 = arith.maximumf %62, %72 : vector<8x1xf32>
    %74 = math.log %73 : vector<8x1xf32>
    %cst_25 = arith.constant 0.000000e+00 : f32
    %75 = vector.broadcast %cst_25 : f32 to vector<8x1xf32>
    %76 = arith.cmpf ogt, %58, %75 : vector<8x1xf32>
    %77 = arith.subf %71, %65 : vector<8x1xf32>
    %78 = arith.mulf %58, %77 : vector<8x1xf32>
    %cst_26 = arith.constant 0.000000e+00 : f32
    %79 = vector.broadcast %cst_26 : f32 to vector<8x1xf32>
    %80 = arith.select %76, %78, %79 : vector<8x1xi1>, vector<8x1xf32>
    %cst_27 = arith.constant 0.000000e+00 : f32
    %81 = vector.broadcast %cst_27 : f32 to vector<8x1xf32>
    %82 = arith.cmpf ogt, %62, %81 : vector<8x1xf32>
    %83 = arith.subf %74, %68 : vector<8x1xf32>
    %84 = arith.mulf %62, %83 : vector<8x1xf32>
    %cst_28 = arith.constant 0.000000e+00 : f32
    %85 = vector.broadcast %cst_28 : f32 to vector<8x1xf32>
    %86 = arith.select %82, %84, %85 : vector<8x1xi1>, vector<8x1xf32>
    %87 = arith.addf %80, %86 : vector<8x1xf32>
    %88 = arith.mulf %87, %11 : vector<8x1xf32>
    %89 = vector.shape_cast %88 : vector<8x1xf32> to vector<1x8x1xf32>
    %cst_29 = arith.constant dense<0.000000e+00> : vector<1xf32>
    %90 = vector.multi_reduction <add>, %89, %cst_29 [1, 2] : vector<1x8x1xf32> to vector<1xf32>
    %91 = vector.shape_cast %90 : vector<1xf32> to vector<1x1x1xf32>
    %92 = vector.extract %91[0, 0, 0] : f32 from vector<1x1x1xf32>
    %93 = arith.subf %35, %39 : vector<8x1xf32>
    %cst_30 = arith.constant 1.000000e-30 : f32
    %94 = vector.broadcast %cst_30 : f32 to vector<8x1xf32>
    %95 = arith.maximumf %93, %94 : vector<8x1xf32>
    %96 = arith.subf %50, %54 : vector<8x1xf32>
    %cst_31 = arith.constant 1.000000e-30 : f32
    %97 = vector.broadcast %cst_31 : f32 to vector<8x1xf32>
    %98 = arith.maximumf %96, %97 : vector<8x1xf32>
    %99 = arith.subf %0, %1 : vector<8x128xf32>
    %100 = vector.broadcast %4 : f32 to vector<8x128xf32>
    %101 = arith.mulf %99, %100 : vector<8x128xf32>
    %cst_32 = arith.constant 0.000000e+00 : f32
    %102 = vector.broadcast %cst_32 : f32 to vector<8x128xf32>
    %103 = arith.select %7, %102, %48 : vector<8x128xi1>, vector<8x128xf32>
    %104 = arith.mulf %103, %101 : vector<8x128xf32>
    %cst_33 = arith.constant dense<0.000000e+00> : vector<8xf32>
    %105 = vector.multi_reduction <add>, %104, %cst_33 [1] : vector<8x128xf32> to vector<8xf32>
    %106 = vector.shape_cast %105 : vector<8xf32> to vector<8x1xf32>
    %107 = arith.divf %106, %98 : vector<8x1xf32>
    %108 = arith.subf %41, %56 : vector<8x1xf32>
    %109 = arith.addf %107, %108 : vector<8x1xf32>
    %110 = math.log %95 : vector<8x1xf32>
    %111 = arith.addf %109, %110 : vector<8x1xf32>
    %112 = math.log %98 : vector<8x1xf32>
    %113 = arith.subf %111, %112 : vector<8x1xf32>
    %114 = arith.mulf %113, %11 : vector<8x1xf32>
    %115 = vector.shape_cast %114 : vector<8x1xf32> to vector<1x8x1xf32>
    %cst_34 = arith.constant dense<0.000000e+00> : vector<1xf32>
    %116 = vector.multi_reduction <add>, %115, %cst_34 [1, 2] : vector<1x8x1xf32> to vector<1xf32>
    %117 = vector.shape_cast %116 : vector<1xf32> to vector<1x1x1xf32>
    %118 = vector.extract %117[0, 0, 0] : f32 from vector<1x1x1xf32>
    %119 = tpu.iota {dimensions = array<i32: 0>} : vector<8x128xi32>
    %120 = tpu.iota {dimensions = array<i32: 1>} : vector<8x128xi32>
    %c0_i32_35 = arith.constant 0 : i32
    %121 = vector.broadcast %c0_i32_35 : i32 to vector<8x128xi32>
    %122 = arith.cmpi eq, %119, %121 : vector<8x128xi32>
    %c0_i32_36 = arith.constant 0 : i32
    %123 = vector.broadcast %c0_i32_36 : i32 to vector<8x128xi32>
    %124 = arith.cmpi eq, %120, %123 : vector<8x128xi32>
    %125 = arith.andi %122, %124 : vector<8x128xi1>
    %c1_i32 = arith.constant 1 : i32
    %126 = vector.broadcast %c1_i32 : i32 to vector<8x128xi32>
    %127 = arith.cmpi eq, %120, %126 : vector<8x128xi32>
    %128 = arith.andi %122, %127 : vector<8x128xi1>
    %c2_i32 = arith.constant 2 : i32
    %129 = vector.broadcast %c2_i32 : i32 to vector<8x128xi32>
    %130 = arith.cmpi eq, %120, %129 : vector<8x128xi32>
    %131 = arith.andi %122, %130 : vector<8x128xi1>
    %cst_37 = arith.constant 0.000000e+00 : f32
    %132 = vector.broadcast %118 : f32 to vector<8x128xf32>
    %133 = vector.broadcast %cst_37 : f32 to vector<8x128xf32>
    %134 = arith.select %131, %132, %133 : vector<8x128xi1>, vector<8x128xf32>
    %135 = vector.broadcast %92 : f32 to vector<8x128xf32>
    %136 = arith.select %128, %135, %134 : vector<8x128xi1>, vector<8x128xf32>
    %137 = vector.broadcast %30 : f32 to vector<8x128xf32>
    %138 = arith.select %125, %137, %136 : vector<8x128xi1>, vector<8x128xf32>
    %c0_38 = arith.constant 0 : index
    %c0_39 = arith.constant 0 : index
    %c0_40 = arith.constant 0 : index
    %139 = vector.load %arg5[%c0_38, %c0_39, %c0_40] : memref<1x8x128xf32, #tpu.memory_space<vmem>>, vector<1x8x128xf32>
    %140 = vector.shape_cast %139 : vector<1x8x128xf32> to vector<8x128xf32>
    %141 = vector.shape_cast %138 : vector<8x128xf32> to vector<1x8x128xf32>
    tpu.vector_store %arg5[%c0_38, %c0_39, %c0_40], %141 {strides = array<i32>} : memref<1x8x128xf32, #tpu.memory_space<vmem>>, vector<1x8x128xf32>,
    return
  }
  func.func @transform_0(%arg0: i32) -> (i32, i32) {
    %c0_i32 = arith.constant 0 : i32
    %c0_i32_0 = arith.constant 0 : i32
    return %arg0, %c0_i32 : i32, i32
  }
  func.func @transform_1(%arg0: i32) -> (i32, i32) {
    %c0_i32 = arith.constant 0 : i32
    %c0_i32_0 = arith.constant 0 : i32
    return %arg0, %c0_i32 : i32, i32
  }
  func.func @transform_2(%arg0: i32) -> (i32, i32) {
    %c0_i32 = arith.constant 0 : i32
    %c0_i32_0 = arith.constant 0 : i32
    return %arg0, %c0_i32 : i32, i32
  }
  func.func @transform_3(%arg0: i32) -> (i32, i32) {
    %c0_i32 = arith.constant 0 : i32
    %c0_i32_0 = arith.constant 0 : i32
    %c0_i32_1 = arith.constant 0 : i32
    return %c0_i32, %c0_i32_0 : i32, i32
  }
  func.func @transform_4(%arg0: i32) -> (i32, i32, i32) {
    %c0_i32 = arith.constant 0 : i32
    %c0_i32_0 = arith.constant 0 : i32
    %c0_i32_1 = arith.constant 0 : i32
    return %arg0, %c0_i32, %c0_i32_0 : i32, i32, i32
  }
}

</mosaic_0001>

<bundles_post_ra>
// kernel: tpu_custom_call.1
= control target key start
LH: loop header
LB: loop body
LE: loop exit
PB: predicated region body
PF: predicated region fallthrough
CT: control target
= control target key end

     0   :  { %v248_v3 = vmov 0   ;;  %s327_s0 = inlined_call_operand.vmem [shape: f32[8,128], index: 0, kind: input, shape index: {}]   ;;  %s328_s1 = inlined_call_operand.vmem [shape: f32[8,128], index: 1, kind: input, shape index: {}]   ;;  %s329_s2 = inlined_call_operand.vmem [shape: s32[8,1], index: 2, kind: input, shape index: {}]   ;;  %s330_s3 = inlined_call_operand.<no memory space> [shape: f32[1,1], index: 3, kind: input, shape index: {}]   ;;  %s331_s4 = inlined_call_operand.hbm [shape: f32[1,8,128], index: 4, kind: output, shape index: {}]  }
   0x1   :  { %v20_v0 = vld [vmem:[%s328_s1] sm:$0xff]  ;;  %v23_v2 = vstv %s330_s3  ;;  %194 = vset.pattern.permute.xlu1 %v248_v3 }
   0x2   :  { %v282_v1 = vld [vmem:[%s329_s2] sm:$0xff]  ;;  %35 = vmax.xlane.f32.xlu0 %v20_v0  ;;  %196 = vrcp.f32 %v23_v2 }
   0x3   :  { %10 = vsyncpa [#allocation4], 0  ;;  %v19_v4 = vld [vmem:[%s327_s0] sm:$0xff]  ;;  %29 = vperm.xlu1 %194, %v282_v1   ;;  %195 = vset.pattern.permute.xlu0 %v248_v3  ;;  %v26_v15 = vlaneseq  ;;  %vm32_vm1 = vcmp.ge.s32.totalorder %v282_v1, 0  ;;  %vm50_vm2 = vcmask 7168   ;;  %s250_s23 = smov [#allocation3]  }
   0x4   :  { %v125_v23 = vsub.f32 %v19_v4, %v20_v0  ;;  %s174_s24 = sshll.u32 %s250_s23, 4  ;;  %s175_s24 = int_to_ptr.vmem [resolvable:$true] %s174_s24 }
   0x5   :  { %v299_v17 = vand.u32 127, %v26_v15  ;;  %s224_s25 = scalar_lea.vmem %s175_s24, 128  ;;  %p229_p1 = scmp.lt.s32.totalorder %s175_s24, %s175_s24 }
   0x6   :  { %71 = vmax.xlane.f32.xlu0 %v19_v4  ;;  %p225_p0 = scmp.ne.s32.totalorder %s175_s24, %s224_s25  ;;  %p230_p2 = scmp.lt.s32.totalorder %s224_s25, %s224_s25 }
   0x7   :  { %vm159_vm6 = vcmp.eq.s32.totalorder %v299_v17, 2  ;;  %vm157_vm7 = vcmp.eq.s32.totalorder %v299_v17, 1  ;;  %vm155_vm8 = vcmp.eq.s32.totalorder %v299_v17, 0 }
   0x8   :  { %p231_p3 = por %p230_p2, %p229_p1 }
   0xa   :  { %p232_p4 = pnand %p231_p3, %p225_p0 }
   0xc   :  { %v197_v5 = vpop.eup %196 }
   0xd   :  { %183 = vpush %v197_v5 }
  0x3e   :  { %s184_s1 = spop %183 }
  0x3f   :  { %v294_v8 = vstv %s184_s1 }
  0x40   :  { %v126_v26 = vmul.f32 %v125_v23, %v294_v8 }
  0x82   :  { %v30_v19 = vpop.permute.xlu1 %29 }
  0x83   :  { %vm31_vm0 = vcmp.eq.s32.totalorder %v299_v17, %v30_v19 }
  0x84   :  { %v42_v28 = vsel %vm31_vm0, %v20_v0, 0.0 }
  0x8f   :  { %v291_v6 = vpop.xlane.xlu0 %35 }
  0x90   :  { %v37_v7 = vsub.f32 %v20_v0, %v291_v6  ;;  %v70_v53 = vmul.f32 %v294_v8, %v291_v6 }
  0x92   :  { %v62_v9 = vmul.f32 %v294_v8, %v37_v7  ;;  %v38_v18 = vmul.f32 1.442695, %v37_v7 }
  0x93   :  { %v72_v10 = vpop.xlane.xlu0 %71 }
  0x94   :  { %v63_v11 = vmul.f32 1.442695, %v62_v9  ;;  %v73_v12 = vsub.f32 %v19_v4, %v72_v10  ;;  %v82_v49 = vmul.f32 %v72_v10, %v294_v8 }
  0x96   :  { %198 = vpow2.f32 %v63_v11  ;;  %v74_v13 = vmul.f32 %v73_v12, %v294_v8  ;;  %v133_v57 = vsub.f32 %v70_v53, %v82_v49  ;;  %v249_v8 = vmov 0.0  }
  0x97   :  { %v182_v9 = vsel %vm32_vm1, 1.0, %v249_v8 }
  0x98   :  { %v75_v14 = vmul.f32 1.442695, %v74_v13 }
  0x9a   :  { %200 = vpow2.f32 %v75_v14 }
  0x9b   :  { %202 = vpow2.f32 %v38_v18 }
  0xa0   :  { %v199_v16 = vpop.eup %198 }
  0xa1   :  { %65 = vadd.xlane.f32.xlu1 %v199_v16  ;;  %v67_v21 = vsel %vm31_vm0, %v199_v16, 0.0 }
  0xa4   :  { %v201_v20 = vpop.eup %200 }
  0xa5   :  { %77 = vadd.xlane.f32.xlu0 %v201_v20  ;;  %v79_v22 = vsel %vm31_vm0, %v201_v20, 0.0  ;;  %v203_v24 = vpop.eup %202  ;;  %v127_v25 = vsel %vm31_vm0, 0.0, %v201_v20 }
  0xa6   :  { %v128_v27 = vmul.f32 %v127_v25, %v126_v26 }
  0xa9   :  { %68 = vadd.xlane.f32.xlu0 %v67_v21 }
  0xad   :  { %80 = vadd.xlane.f32.xlu0 %v79_v22 }
  0xb1   :  { %40 = vadd.xlane.f32.xlu0 %v203_v24 }
  0xb5   :  { %129 = vadd.xlane.f32.xlu0 %v128_v27 }
  0xb9   :  { %43 = vadd.xlane.f32.xlu0 %v42_v28 }
 0x12e   :  { %v66_v29 = vpop.xlane.xlu1 %65 }
 0x12f   :  { %204 = vrcp.f32 %v66_v29 }
 0x132   :  { %v78_v30 = vpop.xlane.xlu0 %77 }
 0x133   :  { %206 = vrcp.f32 %v78_v30 }
 0x136   :  { %v69_v31 = vpop.xlane.xlu0 %68 }
 0x137   :  { %v121_v32 = vsub.f32 %v66_v29, %v69_v31 }
 0x139   :  { %v205_v33 = vpop.eup %204  ;;  %v122_v35 = vmax.f32 %v121_v32, 1e-30 }
 0x13a   :  { %v84_v34 = vmul.f32 %v205_v33, %v69_v31  ;;  %v81_v36 = vpop.xlane.xlu0 %80 }
 0x13b   :  { %v123_v37 = vsub.f32 %v78_v30, %v81_v36  ;;  %208 = vlog2.f32 %v122_v35 }
 0x13c   :  { %v87_v38 = vsub.f32 1.0, %v84_v34  ;;  %v89_v39 = vmax.f32 %v84_v34, 1e-30 }
 0x13d   :  { %v207_v40 = vpop.eup %206  ;;  %v124_v41 = vmax.f32 %v123_v37, 1e-30 }
 0x13e   :  { %v92_v42 = vmax.f32 %v87_v38, 1e-30  ;;  %v86_v43 = vmul.f32 %v207_v40, %v81_v36  ;;  %v41_v46 = vpop.xlane.xlu0 %40 }
 0x13f   :  { %210 = vrcp.f32 %v124_v41 }
 0x140   :  { %212 = vlog2.f32 %v89_v39  ;;  %v88_v44 = vsub.f32 1.0, %v86_v43  ;;  %v95_v45 = vmax.f32 %v86_v43, 1e-30  ;;  %vm101_vm3 = vcmp.gt.f32.partialorder %v86_v43, 0.0 }
 0x141   :  { %214 = vlog2.f32 %v92_v42 }
 0x142   :  { %216 = vlog2.f32 %v95_v45  ;;  %v98_v47 = vmax.f32 %v88_v44, 1e-30  ;;  %v130_v51 = vpop.xlane.xlu0 %129  ;;  %vm105_vm4 = vcmp.gt.f32.partialorder %v88_v44, 0.0 }
 0x143   :  { %218 = vlog2.f32 %v41_v46 }
 0x144   :  { %220 = vlog2.f32 %v98_v47 }
 0x145   :  { %222 = vlog2.f32 %v124_v41  ;;  %v209_v48 = vpop.eup %208 }
 0x146   :  { %v136_v4 = vmul.f32 0.6931472, %v209_v48  ;;  %v44_v10 = vpop.xlane.xlu0 %43  ;;  %v153_v48 = vshrl.u32 %v26_v15, 7 }
 0x148   :  { %vm154_vm5 = vcmp.eq.s32.totalorder %v153_v48, 0 }
 0x149   :  { %v211_v50 = vpop.eup %210  ;;  %vm160_vm9 = vmand %vm154_vm5, %vm159_vm6 }
 0x14a   :  { %v213_v52 = vpop.eup %212  ;;  %v132_v54 = vmul.f32 %v211_v50, %v130_v51  ;;  %vm158_vm10 = vmand %vm154_vm5, %vm157_vm7 }
 0x14b   :  { %v215_v55 = vpop.eup %214  ;;  %v91_v59 = vmul.f32 0.6931472, %v213_v52  ;;  %vm156_vm11 = vmand %vm154_vm5, %vm155_vm8 }
 0x14c   :  { %v217_v56 = vpop.eup %216  ;;  %v134_v63 = vadd.f32 %v133_v57, %v132_v54  ;;  %v94_v0 = vmul.f32 0.6931472, %v215_v55 }
 0x14d   :  { %v219_v58 = vpop.eup %218  ;;  %v97_v60 = vmul.f32 0.6931472, %v217_v56 }
 0x14e   :  { %v221_v61 = vpop.eup %220  ;;  %v46_v62 = vmul.f32 0.6931472, %v219_v58  ;;  %v137_v13 = vadd.f32 %v136_v4, %v134_v63 }
 0x14f   :  { %v100_v2 = vmul.f32 0.6931472, %v221_v61  ;;  %v102_v3 = vsub.f32 %v97_v60, %v91_v59  ;;  %v223_v7 = vpop.eup %222 }
 0x150   :  { %v47_v5 = vadd.f32 %v46_v62, %v291_v6  ;;  %v139_v1 = vmul.f32 0.6931472, %v223_v7 }
 0x151   :  { %v103_v11 = vmul.f32 %v102_v3, %v86_v43  ;;  %v106_v12 = vsub.f32 %v100_v2, %v94_v0 }
 0x152   :  { %v48_v14 = vsub.f32 %v47_v5, %v44_v10  ;;  %v140_v6 = vsub.f32 %v137_v13, %v139_v1 }
 0x153   :  { %v107_v16 = vmul.f32 %v106_v12, %v88_v44  ;;  %v104_v19 = vsel %vm101_vm3, %v103_v11, 0.0 }
 0x154   :  { %v49_v18 = vmul.f32 %v182_v9, %v48_v14  ;;  %v141_v25 = vmul.f32 %v182_v9, %v140_v6 }
 0x155   :  { %v108_v20 = vsel %vm105_vm4, %v107_v16, 0.0 }
 0x156   :  { %v51_v21 = vsel %vm50_vm2, %v49_v18, 0.0  ;;  %v109_v22 = vadd.f32 %v108_v20, %v104_v19  ;;  %v142_v26 = vsel %vm50_vm2, %v141_v25, 0.0 }
 0x157   :  { %52 = vadd.xlane.f32.xlu0 %v51_v21 }
 0x158   :  { %v110_v23 = vmul.f32 %v182_v9, %v109_v22 }
 0x15a   :  { %v111_v24 = vsel %vm50_vm2, %v110_v23, 0.0 }
 0x15b   :  { %112 = vadd.xlane.f32.xlu0 %v111_v24 }
 0x15f   :  { %143 = vadd.xlane.f32.xlu0 %v142_v26 }
 0x1e4   :  { %v53_v27 = vpop.xlane.xlu0 %52 }
 0x1e5   :  { %v54_v28 = vrot.slane %v53_v27, 4 }
 0x1e7   :  { %v55_v29 = vadd.f32 %v54_v28, %v53_v27 }
 0x1e8   :  { %v113_v30 = vpop.xlane.xlu0 %112 }
 0x1e9   :  { %v56_v31 = vrot.slane %v55_v29, 2  ;;  %v114_v32 = vrot.slane %v113_v30, 4 }
 0x1eb   :  { %v115_v33 = vadd.f32 %v114_v32, %v113_v30  ;;  %v57_v34 = vadd.f32 %v56_v31, %v55_v29 }
 0x1ec   :  { %v144_v35 = vpop.xlane.xlu0 %143 }
 0x1ed   :  { %v116_v36 = vrot.slane %v115_v33, 2  ;;  %v145_v37 = vrot.slane %v144_v35, 4  ;;  %v58_v38 = vrot.slane %v57_v34, 1 }
 0x1ef   :  { %v146_v39 = vadd.f32 %v145_v37, %v144_v35  ;;  %v59_v40 = vadd.f32 %v58_v38, %v57_v34  ;;  %v117_v41 = vadd.f32 %v116_v36, %v115_v33 }
 0x1f1   :  { %v147_v42 = vrot.slane %v146_v39, 2  ;;  %185 = vpush %v59_v40  ;;  %v118_v43 = vrot.slane %v117_v41, 1 }
 0x1f3   :  { %v148_v44 = vadd.f32 %v147_v42, %v146_v39  ;;  %v119_v45 = vadd.f32 %v118_v43, %v117_v41 }
 0x1f5   :  { %187 = vpush %v119_v45  ;;  %v149_v46 = vrot.slane %v148_v44, 1 }
 0x1f7   :  { %v150_v47 = vadd.f32 %v149_v46, %v148_v44 }
 0x1f9   :  { %189 = vpush %v150_v47 }
 0x222   :  { %s186_s0 = spop %185 }
 0x223   :  { %v165_v52 = vstv %s186_s0 }
 0x226   :  { %s188_s2 = spop %187 }
 0x227   :  { %v163_v50 = vstv %s188_s2 }
 0x22a   :  { %s190_s3 = spop %189 }
 0x22b   :  { %v161_v49 = vstv %s190_s3 }
 0x22c   :  { %v162_v51 = vsel %vm160_vm9, %v161_v49, 0.0 }
 0x22d   :  { %v164_v15 = vsel %vm158_vm10, %v163_v50, %v162_v51 }
 0x22e   :  { %v166_v53 = vsel %vm156_vm11, %v165_v52, %v164_v15 }
 0x22f   :  { %167 = vst [vmem:[#allocation3] sm:$0xff] %v166_v53 }
 0x230   :  { %235 = shalt.err (!%p232_p4)
}
 0x231   :  { %s236_s28 = scalar_lea.hbm %s331_s4, 128 }
 0x232   :  { %p237_p5 = scmp.ne.s32.totalorder %s331_s4, %s236_s28  ;;  %p240_p6 = scmp.lt.u32.totalorder %s236_s28, %s331_s4 }
 0x234   :  { %p242_p7 = pnand %p240_p6, %p237_p5 }
 0x236   :  { %245 = shalt.err (!%p242_p7)
}
 0x237   :  { %177 = dma.vmem_to_hbm [thread:$0]  %s175_s24, 128, %s331_s4, [#allocation4]  }
 0x238   :  { %246 = dma.done.wait [#allocation4], 128  }
 0x239   :  { %247 = vsyncadd [#allocation4], 4294967168 }
 0x23a   :  { %181 = vsyncpa [#allocation4], 1 }

</bundles_post_ra>
